<compile_context>
chip_gen: v5e
topology: v5e:2x2
jax: 0.10.0
libtpu: 0.0.40
codegen_flags: <defaults>
</compile_context>

<pallas_src>
import math
import functools
import numpy as np
import jax
import jax.numpy as jnp
from jax.experimental import pallas as pl
from jax.experimental.pallas import tpu as pltpu

# ---- SPPloss hyper-parameters (deterministic, set in-script) ----------------
MAX_WEIGHT = 2.0
MIN_WEIGHT = 0.5
ONLY_LAST = True          # only_last=True path (single NCHW tensor pair)
SPP_LAYER = 5             # num_levels for SPP
TOPK = 4                  # top_k = D // TOPK


def _round_up(x, m):
    return ((x + m - 1) // m) * m


# ---- SPP pooling matrix (glue: parameter construction, plain numpy) ---------
def _build_spp_matrix(h, w, num_levels):
    """Columns of P implement F.avg_pool2d (count_include_pad=True) per level.

    Returns (P_padded, s_valid).  P_padded has its column count rounded up to a
    multiple of 128 (zero columns) so the pooling kernel's output is lane-dense.
    """
    cols = []
    for i in range(num_levels):
        level = i + 1
        kh, kw = math.ceil(h / level), math.ceil(w / level)
        ph = math.floor((kh * level - h + 1) / 2)
        pw = math.floor((kw * level - w + 1) / 2)
        oh = (h + 2 * ph - kh) // kh + 1
        ow = (w + 2 * pw - kw) // kw + 1
        inv = 1.0 / (kh * kw)  # count_include_pad=True -> fixed divisor
        for oi in range(oh):
            r0 = oi * kh - ph
            for oj in range(ow):
                c0 = oj * kw - pw
                col = np.zeros((h, w), dtype=np.float32)
                r_lo, r_hi = max(r0, 0), min(r0 + kh, h)
                c_lo, c_hi = max(c0, 0), min(c0 + kw, w)
                if r_lo < r_hi and c_lo < c_hi:
                    col[r_lo:r_hi, c_lo:c_hi] = inv
                cols.append(col.reshape(-1))
    P = np.stack(cols, axis=1)                       # (H*W, S)
    s = P.shape[1]
    s_pad = _round_up(s, 128)
    if s_pad != s:
        P = np.concatenate([P, np.zeros((h * w, s_pad - s), np.float32)], axis=1)
    return jnp.asarray(P), s


# ---- Pallas kernel 1: fused (student+teacher) SPP pooling as tiled matmul ---
def _pool_kernel(x_ref, p_ref, o_ref):
    o_ref[...] = jnp.dot(x_ref[...], p_ref[...],
                         preferred_element_type=jnp.float32)


def _spp_pool(x_flat, P):
    """x_flat: (R, H*W) flattened feature-map rows -> (R, S_pad) pooled."""
    rows, hw = x_flat.shape
    s_pad = P.shape[1]
    # Row tile: biggest that keeps double-buffered x/out tiles modest; P stays
    # resident per grid step.
    # TODO(synk): for very large H*W, tile the K (H*W) axis and/or exploit P's
    # per-level block sparsity (reshape+mean per level) instead of one dense
    # resident P tile; re-derive the VMEM budget for v7x's 64 MiB.
    per_row_bytes = 4 * 2 * (hw + s_pad)
    tr = max(8, min(256, ((12 * 1024 * 1024) // per_row_bytes) // 8 * 8))
    tr = min(tr, _round_up(rows, 8))
    r_pad = _round_up(rows, tr)
    if r_pad != rows:
        x_flat = jnp.concatenate(
            [x_flat, jnp.zeros((r_pad - rows, hw), x_flat.dtype)], axis=0)

    out = pl.pallas_call(
        _pool_kernel,
        out_shape=jax.ShapeDtypeStruct((r_pad, s_pad), jnp.float32),
        grid=(r_pad // tr,),
        in_specs=[pl.BlockSpec((tr, hw), lambda i: (i, 0)),
                  pl.BlockSpec((hw, s_pad), lambda i: (0, 0))],
        out_specs=pl.BlockSpec((tr, s_pad), lambda i: (i, 0)),
        compiler_params=pltpu.CompilerParams(
            dimension_semantics=("parallel",)),
    )(x_flat, P)
    return out[:rows]


# ---- Pallas kernel 2: decoupled top-k L2 loss (O(N*D)) ----------------------
def _loss_kernel(gs_ref, gt_ref, thr_ref, o_ref, *, max_w, min_w, batch):
    eps = 1e-12
    gs = gs_ref[...]                 # (N, D) raw student SPP features
    gt = gt_ref[...]                 # (N, D) raw teacher SPP features
    thr = thr_ref[...]               # (N, 1) k-th largest raw teacher value

    # F.normalize(v, dim=0) per row: v / max(||v||, eps) == v * rsqrt(max(sumsq, eps^2))
    ns = gs * jax.lax.rsqrt(
        jnp.maximum(jnp.sum(gs * gs, axis=1, keepdims=True), eps * eps))
    nt = gt * jax.lax.rsqrt(
        jnp.maximum(jnp.sum(gt * gt, axis=1, keepdims=True), eps * eps))

    # Top-k partition via precomputed per-row threshold (raw ordering equals
    # normalized ordering: positive per-row scale).  >= selects exactly k
    # elements for distinct values; ties at the boundary may select more
    # (same caveat as the previous rank-counting version).
    mask = (gt >= thr).astype(jnp.float32)

    diff = nt - ns
    sq = diff * diff
    tot = jnp.sum(sq, axis=1, keepdims=True)            # (N, 1)
    top = jnp.sum(mask * sq, axis=1, keepdims=True)     # (N, 1)
    d_max = jnp.sqrt(top)
    d_min = jnp.sqrt(jnp.maximum(tot - top, 0.0))       # reuse: no 2nd masked reduce
    per = max_w * d_max + min_w * d_min                 # (N, 1)
    total = jnp.sum(per, axis=0, keepdims=True) * (1.0 / batch)   # (1, 1)
    # Lane-dense (8,128) writeback; wrapper reads [0, 0].
    o_ref[...] = pl.broadcast_to(total, (8, 128))


def _depcoupled_loss(g_s, g_t):
    n, d = g_s.shape
    top_k = d // TOPK
    # Per-row k-th largest raw teacher value (torch.topk selection boundary).
    thr = jax.lax.top_k(g_t, top_k)[0][:, top_k - 1:top_k]        # (N, 1)
    kernel = functools.partial(_loss_kernel, max_w=MAX_WEIGHT,
                               min_w=MIN_WEIGHT, batch=n)
    out = pl.pallas_call(
        kernel,
        out_shape=jax.ShapeDtypeStruct((8, 128), jnp.float32),
        grid=(1,),
        in_specs=[pl.BlockSpec((n, d), lambda i: (0, 0)),
                  pl.BlockSpec((n, d), lambda i: (0, 0)),
                  pl.BlockSpec((n, 1), lambda i: (0, 0))],
        out_specs=pl.BlockSpec((8, 128), lambda i: (0, 0)),
    )(g_s, g_t, thr)
    return out[0, 0]


# ---- Forward ----------------------------------------------------------------
def spploss_forward(f_s, f_t):
    """SPPloss.forward with only_last=True: f_s / f_t are single NCHW tensors."""
    assert ONLY_LAST
    n, c, h, w = f_s.shape
    P, s = _build_spp_matrix(h, w, SPP_LAYER)
    # Fuse student+teacher pooling into one kernel call (P loaded once).
    x_all = jnp.concatenate([f_s, f_t], axis=0).astype(jnp.float32)
    pooled = _spp_pool(x_all.reshape(2 * n * c, h * w), P)        # (2*N*C, S_pad)
    feats = pooled.reshape(2, n, c, -1)[..., :s].reshape(2, n, c * s)
    # NOTE: PyTorch's level-major concat order is a fixed permutation of the
    # feature axis shared by student and teacher; the loss is permutation
    # invariant, so no reordering is needed.
    return _depcoupled_loss(feats[0], feats[1])


# ---- Pure-JAX reference (PyTorch-faithful, for a sanity check only) ---------
def _reference(f_s, f_t):
    n, c, h, w = f_s.shape

    def feats(x):
        pieces = []
        for i in range(SPP_LAYER):
            level = i + 1
            kh, kw = math.ceil(h / level), math.ceil(w / level)
            ph = math.floor((kh * level - h + 1) / 2)
            pw = math.floor((kw * level - w + 1) / 2)
            oh = (h + 2 * ph - kh) // kh + 1
            ow = (w + 2 * pw - kw) // kw + 1
            xp = jnp.pad(x, ((0, 0), (0, 0), (ph, ph), (pw, pw)))
            xp = xp[:, :, :oh * kh, :ow * kw]
            pooled = xp.reshape(n, c, oh, kh, ow, kw).mean(axis=(3, 5))
            pieces.append(pooled.reshape(n, -1))
        return jnp.concatenate(pieces, axis=1)

    gs, gt = feats(f_s), feats(f_t)
    _, d = gs.shape
    top_k = d // TOPK
    total = 0.0
    for i in range(n):
        ns = gs[i] / jnp.maximum(jnp.linalg.norm(gs[i]), 1e-12)
        nt = gt[i] / jnp.maximum(jnp.linalg.norm(gt[i]), 1e-12)
        _, idx = jax.lax.top_k(nt, top_k)
        mask = jnp.zeros((d,), jnp.float32).at[idx].set(1.0)
        sq = (nt - ns) ** 2
        dmax = jnp.sqrt(jnp.sum(mask * sq))
        dmin = jnp.sqrt(jnp.sum((1.0 - mask) * sq))
        total = total + MAX_WEIGHT * dmax + MIN_WEIGHT * dmin
    return total / n


if __name__ == "__main__":
    key = jax.random.PRNGKey(0)
    k_s, k_t = jax.random.split(key)
    # small shapes consistent with the module: batch=2, channels=4, spatial=16
    f_s = jax.random.normal(k_s, (2, 4, 16, 16), dtype=jnp.float32)
    f_t = jax.random.normal(k_t, (2, 4, 16, 16), dtype=jnp.float32)

    loss = jax.block_until_ready(spploss_forward(f_s, f_t))
    ref = jax.block_until_ready(_reference(f_s, f_t))

    assert np.isfinite(float(loss))
    assert np.allclose(float(loss), float(ref), rtol=2e-3, atol=2e-3), (float(loss), float(ref))
    print("KERNEL_OK")
</pallas_src>

<mosaic_0001>
module attributes {stable_mosaic.version = 11 : i64} {
  func.func @_pool_kernel(%arg0: i32, %arg1: memref<16x256xf32, #tpu.memory_space<vmem>>, %arg2: memref<256x128xf32, #tpu.memory_space<vmem>>, %arg3: memref<16x128xf32, #tpu.memory_space<vmem>>) attributes {dimension_semantics = [#tpu.dimension_semantics<parallel>], iteration_bounds = array<i64: 1>, scalar_prefetch = 0 : i64, scratch_operands = 0 : i64, tpu.core_type = #tpu.core_type<tc>, window_params = [{transform_indices = @transform_0, window_bounds = array<i64: 16, 256>}, {pipeline_mode = #tpu.pipeline_mode<synchronous>, transform_indices = @transform_1, window_bounds = array<i64: 256, 128>}, {transform_indices = @transform_2, window_bounds = array<i64: 16, 128>}]} {
    %c0 = arith.constant 0 : index
    %c0_0 = arith.constant 0 : index
    %0 = vector.load %arg1[%c0, %c0_0] : memref<16x256xf32, #tpu.memory_space<vmem>>, vector<16x256xf32>
    %c0_1 = arith.constant 0 : index
    %c0_2 = arith.constant 0 : index
    %1 = vector.load %arg2[%c0_1, %c0_2] : memref<256x128xf32, #tpu.memory_space<vmem>>, vector<256x128xf32>
    %cst = arith.constant dense<0.000000e+00> : vector<16x128xf32>
    %2 = tpu.matmul %0, %1, %cst {dimension_numbers = #tpu.dot_dimension_numbers<[1], [0], [0], [1], [0, 0, 1, 1], [], []>} : vector<16x256xf32>, vector<256x128xf32>, vector<16x128xf32> -> vector<16x128xf32>
    %c0_3 = arith.constant 0 : index
    %c0_4 = arith.constant 0 : index
    %3 = vector.load %arg3[%c0_3, %c0_4] : memref<16x128xf32, #tpu.memory_space<vmem>>, vector<16x128xf32>
    tpu.vector_store %arg3[%c0_3, %c0_4], %2 {strides = array<i32>} : memref<16x128xf32, #tpu.memory_space<vmem>>, vector<16x128xf32>,
    return
  }
  func.func @transform_0(%arg0: i32) -> (i32, i32) {
    %c0_i32 = arith.constant 0 : i32
    %c0_i32_0 = arith.constant 0 : i32
    return %arg0, %c0_i32 : i32, i32
  }
  func.func @transform_1(%arg0: i32) -> (i32, i32) {
    %c0_i32 = arith.constant 0 : i32
    %c0_i32_0 = arith.constant 0 : i32
    %c0_i32_1 = arith.constant 0 : i32
    return %c0_i32, %c0_i32_0 : i32, i32
  }
  func.func @transform_2(%arg0: i32) -> (i32, i32) {
    %c0_i32 = arith.constant 0 : i32
    %c0_i32_0 = arith.constant 0 : i32
    return %arg0, %c0_i32 : i32, i32
  }
}

</mosaic_0001>

<bundles_post_ra>
// kernel: tpu_custom_call.1
= control target key start
LH: loop header
LB: loop body
LE: loop exit
PB: predicated region body
PF: predicated region fallthrough
CT: control target
= control target key end

     0   :  { %7 = vsyncpa [#allocation3], 0  ;;  %s302_s0 = inlined_call_operand.hbm [shape: f32[16,256], index: 0, kind: input, shape index: {}]   ;;  %s303_s1 = inlined_call_operand.hbm [shape: f32[256,128], index: 1, kind: input, shape index: {}]   ;;  %s304_s2 = inlined_call_operand.hbm [shape: f32[16,128], index: 2, kind: output, shape index: {}]  }
   0x1   :  { %8 = vsyncpa [#allocation6], 0 }
   0x2   :  { %9 = vsyncpa [#allocation4], 0  ;;  %s14_s11 = sshll.u32 %s302_s0, 4  ;;  %s265_s12 = smov [#allocation2]   ;;  %s15_s11 = int_to_ptr.hbm [resolvable:$true] %s14_s11 }
   0x3   :  { %s16_s13 = sshll.u32 %s265_s12, 4  ;;  %s27_s16 = sshll.u32 %s303_s1, 4  ;;  %s17_s13 = int_to_ptr.vmem [resolvable:$true] %s16_s13  ;;  %s28_s16 = int_to_ptr.hbm [resolvable:$true] %s27_s16 }
   0x4   :  { %s266_s17 = smov 256   ;;  %s267_s18 = smov 16  }
   0x5   :  { %22 = dma.hbm_to_vmem [thread:$0]  %s15_s11, 512, %s17_s13, [#allocation3], %s266_s17, %s266_s17, %s267_s18  }
   0x6   :  { %s268_s19 = smov [#allocation5]   ;;  %s269_s21 = smov 128  }
   0x7   :  { %s29_s20 = sshll.u32 %s268_s19, 4  ;;  %s270_s22 = smov 8   ;;  %s30_s20 = int_to_ptr.vmem [resolvable:$true] %s29_s20 }
   0x8   :  { %35 = dma.hbm_to_vmem [thread:$0]  %s28_s16, 4096, %s30_s20, [#allocation6], %s269_s21, %s269_s21, %s270_s22  }
   0x9   :  { %259 = dma.done.wait [#allocation3], 512  }
   0xa   :  { %260 = vsyncadd [#allocation3], 4294966784 }
   0xb   :  { %261 = dma.done.wait [#allocation6], 4096  }
   0xc   :  { %262 = vsyncadd [#allocation6], 4294963200  ;;  %v63_v0 = vld [vmem:[#allocation5 + $0x78] sm:$0xff]  ;;  %v62_v2 = vld [vmem:[#allocation5 + $0x70] sm:$0xff]  ;;  %s271_s0 = smov [#allocation7]   ;;  %s134_s25 = sshll.u32 %s304_s2, 4  ;;  %s135_s25 = int_to_ptr.hbm [resolvable:$true] %s134_s25 }
   0xd   :  { %v79_v1 = vld [vmem:[#allocation5 + $0xf8] sm:$0xff]  ;;  %148 = vmatpush.msra.mxu2 %v63_v0  ;;  %v78_v3 = vld [vmem:[#allocation5 + $0xf0] sm:$0xff]  ;;  %v61_v4 = vld [vmem:[#allocation5 + $0x68] sm:$0xff]  ;;  %80 = vmatpush.msra.mxu0 %v63_v0  ;;  %s132_s1 = sshll.u32 %s271_s0, 4  ;;  %s133_s1 = int_to_ptr.vmem [resolvable:$true] %s132_s1 }
   0xe   :  { %164 = vmatpush.msra.mxu3 %v79_v1  ;;  %v77_v5 = vld [vmem:[#allocation5 + $0xe8] sm:$0xff]  ;;  %103 = vmatpush.msra.mxu1 %v79_v1  ;;  %v60_v6 = vld [vmem:[#allocation5 + $0x60] sm:$0xff]  ;;  %v59_v8 = vld [vmem:[#allocation5 + $0x58] sm:$0xff] }
   0xf   :  { %149 = vmatpush.msra.mxu2 %v62_v2  ;;  %v76_v7 = vld [vmem:[#allocation5 + $0xe0] sm:$0xff]  ;;  %81 = vmatpush.msra.mxu0 %v62_v2  ;;  %v75_v9 = vld [vmem:[#allocation5 + $0xd8] sm:$0xff]  ;;  %v58_v10 = vld [vmem:[#allocation5 + $0x50] sm:$0xff] }
  0x10   :  { %165 = vmatpush.msra.mxu3 %v78_v3  ;;  %104 = vmatpush.msra.mxu1 %v78_v3  ;;  %v74_v11 = vld [vmem:[#allocation5 + $0xd0] sm:$0xff]  ;;  %v57_v12 = vld [vmem:[#allocation5 + $0x48] sm:$0xff]  ;;  %v56_v14 = vld [vmem:[#allocation5 + $0x40] sm:$0xff] }
  0x11   :  { %150 = vmatpush.msra.mxu2 %v61_v4  ;;  %82 = vmatpush.msra.mxu0 %v61_v4  ;;  %v73_v13 = vld [vmem:[#allocation5 + $0xc8] sm:$0xff]  ;;  %v72_v15 = vld [vmem:[#allocation5 + $0xc0] sm:$0xff]  ;;  %v55_v16 = vld [vmem:[#allocation5 + $0x38] sm:$0xff] }
  0x12   :  { %166 = vmatpush.msra.mxu3 %v77_v5  ;;  %105 = vmatpush.msra.mxu1 %v77_v5  ;;  %v71_v17 = vld [vmem:[#allocation5 + $0xb8] sm:$0xff]  ;;  %v54_v18 = vld [vmem:[#allocation5 + $0x30] sm:$0xff]  ;;  %v53_v20 = vld [vmem:[#allocation5 + $0x28] sm:$0xff] }
  0x13   :  { %151 = vmatpush.msra.mxu2 %v60_v6  ;;  %83 = vmatpush.msra.mxu0 %v60_v6  ;;  %v70_v19 = vld [vmem:[#allocation5 + $0xb0] sm:$0xff]  ;;  %v69_v21 = vld [vmem:[#allocation5 + $0xa8] sm:$0xff]  ;;  %v52_v22 = vld [vmem:[#allocation5 + $0x20] sm:$0xff] }
  0x14   :  { %167 = vmatpush.msra.mxu3 %v76_v7  ;;  %106 = vmatpush.msra.mxu1 %v76_v7  ;;  %v68_v23 = vld [vmem:[#allocation5 + $0xa0] sm:$0xff]  ;;  %v51_v24 = vld [vmem:[#allocation5 + $0x18] sm:$0xff]  ;;  %v50_v26 = vld [vmem:[#allocation5 + $0x10] sm:$0xff] }
  0x15   :  { %152 = vmatpush.msra.mxu2 %v59_v8  ;;  %84 = vmatpush.msra.mxu0 %v59_v8  ;;  %v67_v25 = vld [vmem:[#allocation5 + $0x98] sm:$0xff]  ;;  %v66_v27 = vld [vmem:[#allocation5 + $0x90] sm:$0xff]  ;;  %v49_v28 = vld [vmem:[#allocation5 + $0x8] sm:$0xff] }
  0x16   :  { %168 = vmatpush.msra.mxu3 %v75_v9  ;;  %107 = vmatpush.msra.mxu1 %v75_v9  ;;  %v65_v29 = vld [vmem:[#allocation5 + $0x88] sm:$0xff]  ;;  %v48_v30 = vld [vmem:[#allocation5] sm:$0xff]  ;;  %v46_v32 = vld [vmem:[#allocation2 + $0x10] sm:$0xff] }
  0x17   :  { %153 = vmatpush.msra.mxu2 %v58_v10  ;;  %85 = vmatpush.msra.mxu0 %v58_v10  ;;  %v64_v31 = vld [vmem:[#allocation5 + $0x80] sm:$0xff]  ;;  %v47_v33 = vld [vmem:[#allocation2 + $0x18] sm:$0xff]  ;;  %v45_v35 = vld [vmem:[#allocation2 + $0x8] sm:$0xff] }
  0x18   :  { %169 = vmatpush.msra.mxu3 %v74_v11  ;;  %108 = vmatpush.msra.mxu1 %v74_v11  ;;  %v44_v34 = vld [vmem:[#allocation2] sm:$0xff] }
  0x19   :  { %154 = vmatpush.msra.mxu2 %v57_v12  ;;  %86 = vmatpush.msra.mxu0 %v57_v12 }
  0x1a   :  { %170 = vmatpush.msra.mxu3 %v73_v13  ;;  %109 = vmatpush.msra.mxu1 %v73_v13 }
  0x1b   :  { %155 = vmatpush.msra.mxu2 %v56_v14  ;;  %87 = vmatpush.msra.mxu0 %v56_v14 }
  0x1c   :  { %171 = vmatpush.msra.mxu3 %v72_v15  ;;  %110 = vmatpush.msra.mxu1 %v72_v15 }
  0x1d   :  { %156 = vmatpush.msra.mxu2 %v55_v16  ;;  %88 = vmatpush.msra.mxu0 %v55_v16 }
  0x1e   :  { %172 = vmatpush.msra.mxu3 %v71_v17  ;;  %111 = vmatpush.msra.mxu1 %v71_v17 }
  0x1f   :  { %157 = vmatpush.msra.mxu2 %v54_v18  ;;  %89 = vmatpush.msra.mxu0 %v54_v18 }
  0x20   :  { %173 = vmatpush.msra.mxu3 %v70_v19  ;;  %112 = vmatpush.msra.mxu1 %v70_v19 }
  0x21   :  { %158 = vmatpush.msra.mxu2 %v53_v20  ;;  %90 = vmatpush.msra.mxu0 %v53_v20 }
  0x22   :  { %174 = vmatpush.msra.mxu3 %v69_v21  ;;  %113 = vmatpush.msra.mxu1 %v69_v21 }
  0x23   :  { %159 = vmatpush.msra.mxu2 %v52_v22  ;;  %91 = vmatpush.msra.mxu0 %v52_v22 }
  0x24   :  { %175 = vmatpush.msra.mxu3 %v68_v23  ;;  %114 = vmatpush.msra.mxu1 %v68_v23 }
  0x25   :  { %160 = vmatpush.msra.mxu2 %v51_v24  ;;  %92 = vmatpush.msra.mxu0 %v51_v24 }
  0x26   :  { %176 = vmatpush.msra.mxu3 %v67_v25  ;;  %115 = vmatpush.msra.mxu1 %v67_v25 }
  0x27   :  { %161 = vmatpush.msra.mxu2 %v50_v26  ;;  %93 = vmatpush.msra.mxu0 %v50_v26 }
  0x28   :  { %177 = vmatpush.msra.mxu3 %v66_v27  ;;  %116 = vmatpush.msra.mxu1 %v66_v27 }
  0x29   :  { %162 = vmatpush.msra.mxu2 %v49_v28  ;;  %94 = vmatpush.msra.mxu0 %v49_v28 }
  0x2a   :  { %178 = vmatpush.msra.mxu3 %v65_v29  ;;  %117 = vmatpush.msra.mxu1 %v65_v29 }
  0x2b   :  { %163 = vmatpush.msra.mxu2 %v48_v30  ;;  %95 = vmatpush.msra.mxu0 %v48_v30 }
  0x2c   :  { %179 = vmatpush.msra.mxu3 %v64_v31  ;;  %99 = vmatmul.f32.vlgmr.msra.gmra.mxu2 %v46_v32 }
  0x2d   :  { %122 = vmatmul.f32.vlgmr.msra.gmra.mxu3 %v47_v33  ;;  %118 = vmatpush.msra.mxu1 %v64_v31 }
  0x2e   :  { %96 = vmatmul.f32.vlgmr.msra.gmra.mxu0 %v44_v34  ;;  %119 = vmatmul.f32.vlgmr.msra.gmra.mxu1 %v45_v35 }
  0xab   :  { %v97_v36 = vpop.f32.mrf.mxu0  ;;  %v120_v37 = vpop.f32.mrf.mxu1 }
  0xac   :  { %v121_v38 = vadd.f32 %v120_v37, %v97_v36 }
  0xae   :  { %126 = vst [vmem:[#allocation7] sm:$0xff] %v121_v38 }
  0xaf   :  { %v100_v39 = vpop.f32.mrf.mxu2 }
  0xb0   :  { %v123_v40 = vpop.f32.mrf.mxu3 }
  0xb1   :  { %v124_v41 = vadd.f32 %v123_v40, %v100_v39 }
  0xb3   :  { %127 = vst [vmem:[#allocation7 + $0x8] sm:$0xff] %v124_v41 }
  0xb4   :  { %140 = dma.vmem_to_hbm [thread:$0]  %s133_s1, 256, %s135_s25, [#allocation4], %s269_s21, %s269_s21, %s270_s22  }
  0xb5   :  { %263 = dma.done.wait [#allocation4], 256  }
  0xb6   :  { %264 = vsyncadd [#allocation4], 4294967040 }
  0xb7   :  { %145 = vsyncpa [#allocation3], 1 }
  0xb8   :  { %146 = vsyncpa [#allocation6], 1 }
  0xb9   :  { %147 = vsyncpa [#allocation4], 1 }

</bundles_post_ra>
